<compile_context>
chip_gen: v5e
topology: v5e:2x2
jax: 0.10.0
libtpu: 0.0.40
codegen_flags: <defaults>
</compile_context>

<pallas_src>
import functools

import jax
import jax.numpy as jnp
from jax.experimental import pallas as pl
from jax.experimental.pallas import tpu as pltpu

ALPHA = 0.1

# Conservative count of live block-sized f32/compute temporaries in the kernel
# body (sanitized p/t, temporal diffs, widened diff, square, mask) used for
# VMEM budgeting.  The double-buffered (8, d_tile) output blocks are ignored
# (a few KiB).
_N_F32_TEMPS = 6


def _sanitize_full(x):
    # torch.nan_to_num(x, nan=0.0, posinf=1.0, neginf=-1.0)
    zero = jnp.asarray(0.0, x.dtype)
    one = jnp.asarray(1.0, x.dtype)
    x = jnp.where(jnp.isnan(x), zero, x)
    x = jnp.where(x == jnp.inf, one, x)
    x = jnp.where(x == -jnp.inf, -one, x)
    return x


def _sanitize_inf(x):
    # nan_to_num on a finite-minus-finite difference: NaN is impossible, only
    # +-inf (overflow) needs remapping -> drop the dead isnan compare/select.
    one = jnp.asarray(1.0, x.dtype)
    x = jnp.where(x == jnp.inf, one, x)
    x = jnp.where(x == -jnp.inf, -one, x)
    return x


def _tc_loss_kernel(p_ref, t_ref, o_ref, *, compute_dtype, b_tile, d_tile,
                    B, D, need_b_mask, need_d_mask, fuse_diff):
    """One (b_tile, T, d_tile) block -> one (8, d_tile) partial-sum block."""
    i = pl.program_id(0)   # batch-block id
    j = pl.program_id(1)   # feature-block id

    p = _sanitize_full(p_ref[...].astype(compute_dtype))
    t = _sanitize_full(t_ref[...].astype(compute_dtype))

    # Temporal first difference along the sequence axis (sliced subtraction:
    # exact nan_to_num boundary semantics, proven lowering path).
    # TODO(synk): if the Mosaic dump shows block-sized copies for the shifted
    # slices, route the shift through pltpu.roll(axis=1) + a last-row mask.
    if fuse_diff:
        # Opt-in algebraic fusion: only deviates from torch when an individual
        # pd/td element overflows to +-inf while the fused diff does not.
        e = p - t
        d = _sanitize_inf(e[:, 1:, :] - e[:, :-1, :])
    else:
        pd = _sanitize_inf(p[:, 1:, :] - p[:, :-1, :])
        td = _sanitize_inf(t[:, 1:, :] - t[:, :-1, :])
        d = pd - td                       # subtract in compute dtype ...
    d = d.astype(jnp.float32)             # ... single widening cast
    sq = d * d

    # Mask overhanging lanes / batch rows on ragged edge blocks only.
    if need_d_mask:
        lane = jax.lax.broadcasted_iota(jnp.int32, sq.shape, 2)
        sq = jnp.where(j * d_tile + lane < D, sq, 0.0)
    if need_b_mask:
        row = jax.lax.broadcasted_iota(jnp.int32, sq.shape, 0)
        sq = jnp.where(i * b_tile + row < B, sq, 0.0)

    # Reduce over batch (VALU) and time (XLU sublane reduce); write a tiny
    # per-(i, j) partial so both grid axes stay dependency-free ("parallel").
    s = jnp.sum(sq, axis=0)                     # (T-1, d_tile)
    s = jnp.sum(s, axis=0, keepdims=True)       # (1, d_tile)
    ridx = jax.lax.broadcasted_iota(jnp.int32, (8, d_tile), 0)
    o_ref[...] = jnp.where(ridx == 0,
                           jnp.broadcast_to(s, (8, d_tile)),
                           jnp.zeros((8, d_tile), jnp.float32))


def _round_up(x, m):
    return ((x + m - 1) // m) * m


def _cdiv(a, b):
    return (a + b - 1) // b


def _vmem_capacity_bytes():
    try:
        return int(pltpu.get_tpu_info().vmem_capacity_bytes)
    except Exception:
        return 64 * 1024 * 1024   # conservative: size for the smallest (v7x)


def _native_16bit_vpu():
    # v6e (Trillium) and later have bf16 VPU lanes; v5e/v5p and older do not.
    try:
        kind = jax.devices()[0].device_kind.lower()
    except Exception:
        return False
    if any(v in kind for v in ("v2", "v3", "v4", "v5")):
        return False
    return any(v in kind for v in ("v6", "v7", "trillium"))


def _choose_tiles(B, T, D, per_elem_bytes, budget_bytes):
    """Pick (b_tile, nb, d_tile, nd, need_b_mask, need_d_mask)."""
    max_elems = max(budget_bytes // per_elem_bytes, 8 * 128)

    # Feature (lane) tile: lane-dense, as large as the budget allows.
    if T * D <= max_elems:
        d_tile = D                       # single full-D block (legal even if D % 128 != 0)
    else:
        d_tile = (max_elems // T) // 128 * 128
        d_tile = max(128, min(d_tile, _round_up(D, 128)))
        if _cdiv(D, d_tile) == 1:
            d_tile = D                   # single block: use the exact width
    nd = _cdiv(D, d_tile)

    # Batch tile from the remaining budget (leading dim: no (8,128) constraint).
    b_tile = min(B, max(1, max_elems // (T * d_tile)))
    if B % b_tile != 0:
        # Prefer a divisor of B (no batch-row masking) unless it shrinks the
        # block by more than ~25%.
        best_div = max(c for c in range(1, b_tile + 1) if B % c == 0)
        if best_div * 4 >= b_tile * 3:
            b_tile = best_div
    nb = _cdiv(B, b_tile)

    need_b_mask = (nb * b_tile != B)
    need_d_mask = (nd * d_tile != D)
    return b_tile, nb, d_tile, nd, need_b_mask, need_d_mask


def temporal_coherence_loss(preds, target, alpha=ALPHA, *,
                            prefer_16bit_compute=None,
                            fuse_diff=False,
                            tile_budget_bytes=None):
    """preds, target: (B, T, ...) -> scalar f32 loss (alpha * MSE of temporal diffs)."""
    B = preds.shape[0]
    T = preds.shape[1]
    if T <= 1:
        return jnp.asarray(0.0, dtype=jnp.float32)

    # Flatten trailing feature dims -> (B, T, D).  NOTE: no dtype cast and no
    # pad copy here — inputs go to the kernel in their original dtype (bf16
    # stays bf16 in HBM) and are cast/sanitized/masked on-chip.
    preds3 = preds.reshape(B, T, -1)
    target3 = target.reshape(B, T, -1)
    D = preds3.shape[-1]
    if D == 0:
        return jnp.asarray(0.0, dtype=jnp.float32)
    count = B * (T - 1) * D

    # ---- compute dtype: bf16 elementwise only where the VPU is native ----
    if prefer_16bit_compute is None:
        prefer_16bit_compute = _native_16bit_vpu()
    compute_dtype = jnp.float32
    if (prefer_16bit_compute
            and preds.dtype == target.dtype
            and preds.dtype == jnp.dtype(jnp.bfloat16)):
        compute_dtype = jnp.bfloat16

    # ---- generation-aware VMEM limit and tile budget ----
    vmem_cap = _vmem_capacity_bytes()
    if vmem_cap >= 128 * 1024 * 1024:          # v5e / v6e
        vmem_limit = 64 * 1024 * 1024
    else:                                      # v7x (64 MiB physical VMEM)
        vmem_limit = min(48 * 1024 * 1024, (vmem_cap * 3) // 4)
    if tile_budget_bytes is None:
        tile_budget_bytes = (vmem_limit * 4) // 5   # headroom for compiler scratch

    in_itemsize = max(jnp.dtype(preds.dtype).itemsize,
                      jnp.dtype(target.dtype).itemsize)
    # 2 inputs x 2 pipeline buffers in HBM dtype + block-sized f32 temporaries.
    per_elem_bytes = 2 * 2 * in_itemsize + _N_F32_TEMPS * 4
    b_tile, nb, d_tile, nd, need_b_mask, need_d_mask = _choose_tiles(
        B, T, D, per_elem_bytes, tile_budget_bytes)

    kernel = functools.partial(
        _tc_loss_kernel,
        compute_dtype=compute_dtype,
        b_tile=b_tile, d_tile=d_tile, B=B, D=D,
        need_b_mask=need_b_mask, need_d_mask=need_d_mask,
        fuse_diff=fuse_diff)

    partials = pl.pallas_call(
        kernel,
        out_shape=jax.ShapeDtypeStruct((nb * 8, nd * d_tile), jnp.float32),
        grid_spec=pltpu.PrefetchScalarGridSpec(
            num_scalar_prefetch=0,
            grid=(nb, nd),
            in_specs=[
                pl.BlockSpec((b_tile, T, d_tile), lambda i, j: (i, 0, j)),
                pl.BlockSpec((b_tile, T, d_tile), lambda i, j: (i, 0, j)),
            ],
            out_specs=pl.BlockSpec((8, d_tile), lambda i, j: (i, j)),
        ),
        compiler_params=pltpu.CompilerParams(
            dimension_semantics=("parallel", "parallel"),
            vmem_limit_bytes=vmem_limit,
        ),
    )(preds3, target3)

    # Tiny finalize: sum the per-(i, j) partials, then alpha / mean scaling.
    loss = jnp.float32(alpha) * (jnp.sum(partials) / jnp.float32(count))
    # The PyTorch module returns 0.0 if the final diff loss is NaN/Inf.
    return jnp.where(jnp.isfinite(loss), loss, jnp.float32(0.0))


def _reference_loss(preds, target, alpha=ALPHA):
    # Pure-JAX reference mirroring the PyTorch module (f32 math).
    if preds.shape[1] <= 1:
        return jnp.float32(0.0)
    p = _sanitize_full(preds.astype(jnp.float32))
    t = _sanitize_full(target.astype(jnp.float32))
    pd = _sanitize_full(p[:, 1:] - p[:, :-1])
    td = _sanitize_full(t[:, 1:] - t[:, :-1])
    loss = alpha * jnp.mean((pd - td) ** 2)
    return jnp.where(jnp.isfinite(loss), loss, jnp.float32(0.0))


if __name__ == "__main__":
    key = jax.random.PRNGKey(0)
    k1, k2, k3, k4 = jax.random.split(key, 4)

    checks = []

    # 1) f32, lane-aligned, NaN/Inf injected to exercise the sanitization path
    preds = jax.random.normal(k1, (2, 8, 256), dtype=jnp.float32)
    target = jax.random.normal(k2, (2, 8, 256), dtype=jnp.float32)
    preds = preds.at[0, 0, 0].set(jnp.nan)
    target = target.at[1, 3, 5].set(jnp.inf)
    checks.append(("f32_aligned", preds, target, 5e-4, 1e-6, {}))

    # 2) f32, wider feature dim (single large lane-dense block)
    preds2 = jax.random.normal(k3, (2, 16, 1024), dtype=jnp.float32)
    target2 = jax.random.normal(k4, (2, 16, 1024), dtype=jnp.float32)
    checks.append(("f32_wide", preds2, target2, 5e-4, 1e-6, {}))

    # 3) bf16 inputs: no wrapper cast; bf16 elementwise only on v6e/v7x
    preds_bf = jax.random.normal(k1, (4, 8, 512), dtype=jnp.float32).astype(jnp.bfloat16)
    target_bf = jax.random.normal(k2, (4, 8, 512), dtype=jnp.float32).astype(jnp.bfloat16)
    checks.append(("bf16", preds_bf, target_bf, 5e-2, 1e-4, {}))

    # 4) 4-D input (trailing dims flattened), unaligned feature dim (D=200)
    preds4 = jax.random.normal(k3, (3, 8, 5, 40), dtype=jnp.float32)
    target4 = jax.random.normal(k4, (3, 8, 5, 40), dtype=jnp.float32)
    checks.append(("f32_unaligned_D", preds4, target4, 5e-4, 1e-6, {}))

    # 5) forced tiny budget -> multi feature-block grid + in-kernel lane mask
    checks.append(("f32_lane_mask_tail", preds4, target4, 5e-4, 1e-6,
                   {"tile_budget_bytes": 32 * 1024}))

    # 6) forced budget -> non-divisor batch tile + in-kernel batch-row mask
    checks.append(("f32_batch_mask_tail", preds4, target4, 5e-4, 1e-6,
                   {"tile_budget_bytes": 128 * 1024}))

    # 7) forced budget -> multi-block grid on both axes, no masking needed
    preds7 = jax.random.normal(k1, (4, 8, 512), dtype=jnp.float32)
    target7 = jax.random.normal(k2, (4, 8, 512), dtype=jnp.float32)
    checks.append(("f32_multiblock", preds7, target7, 5e-4, 1e-6,
                   {"tile_budget_bytes": 96 * 1024}))

    # 8) opt-in fused-diff path (identical semantics for finite inputs)
    checks.append(("f32_fused_diff", preds7, target7, 5e-4, 1e-6,
                   {"fuse_diff": True}))

    for name, p, t, rtol, atol, kwargs in checks:
        got = jax.block_until_ready(temporal_coherence_loss(p, t, **kwargs))
        want = jax.block_until_ready(_reference_loss(p, t))
        assert jnp.isfinite(got), f"{name}: loss is not finite"
        assert jnp.allclose(got, want, rtol=rtol, atol=atol), (name, got, want)

    # seq_len <= 1 -> exactly 0.0
    short = jax.random.normal(k1, (2, 1, 128), dtype=jnp.float32)
    assert float(temporal_coherence_loss(short, short)) == 0.0

    print("KERNEL_OK")
</pallas_src>

<mosaic_0001>
module attributes {stable_mosaic.version = 11 : i64} {
  func.func @_tc_loss_kernel(%arg0: i32, %arg1: i32, %arg2: memref<2x8x256xf32, #tpu.memory_space<vmem>>, %arg3: memref<2x8x256xf32, #tpu.memory_space<vmem>>, %arg4: memref<8x256xf32, #tpu.memory_space<vmem>>) attributes {dimension_semantics = [#tpu.dimension_semantics<parallel>, #tpu.dimension_semantics<parallel>], iteration_bounds = array<i64: 1, 1>, scalar_prefetch = 0 : i64, scratch_operands = 0 : i64, tpu.core_type = #tpu.core_type<tc>, window_params = [{transform_indices = @transform_0, window_bounds = array<i64: 2, 8, 256>}, {transform_indices = @transform_1, window_bounds = array<i64: 2, 8, 256>}, {transform_indices = @transform_2, window_bounds = array<i64: 8, 256>}]} {
    %c0 = arith.constant 0 : index
    %c0_0 = arith.constant 0 : index
    %c0_1 = arith.constant 0 : index
    %0 = vector.load %arg2[%c0, %c0_0, %c0_1] : memref<2x8x256xf32, #tpu.memory_space<vmem>>, vector<2x8x256xf32>
    %1 = arith.cmpf one, %0, %0 : vector<2x8x256xf32>
    %cst = arith.constant 0.000000e+00 : f32
    %2 = vector.broadcast %cst : f32 to vector<2x8x256xf32>
    %3 = arith.select %1, %2, %0 : vector<2x8x256xi1>, vector<2x8x256xf32>
    %cst_2 = arith.constant 0x7F800000 : f32
    %4 = vector.broadcast %cst_2 : f32 to vector<2x8x256xf32>
    %5 = arith.cmpf oeq, %3, %4 : vector<2x8x256xf32>
    %cst_3 = arith.constant 1.000000e+00 : f32
    %6 = vector.broadcast %cst_3 : f32 to vector<2x8x256xf32>
    %7 = arith.select %5, %6, %3 : vector<2x8x256xi1>, vector<2x8x256xf32>
    %cst_4 = arith.constant 0xFF800000 : f32
    %8 = vector.broadcast %cst_4 : f32 to vector<2x8x256xf32>
    %9 = arith.cmpf oeq, %7, %8 : vector<2x8x256xf32>
    %cst_5 = arith.constant 0.000000e+00 : f32
    %cst_6 = arith.constant 1.000000e+00 : f32
    %10 = arith.subf %cst_5, %cst_6 : f32
    %11 = vector.broadcast %10 : f32 to vector<2x8x256xf32>
    %12 = arith.select %9, %11, %7 : vector<2x8x256xi1>, vector<2x8x256xf32>
    %c0_7 = arith.constant 0 : index
    %c0_8 = arith.constant 0 : index
    %c0_9 = arith.constant 0 : index
    %13 = vector.load %arg3[%c0_7, %c0_8, %c0_9] : memref<2x8x256xf32, #tpu.memory_space<vmem>>, vector<2x8x256xf32>
    %14 = arith.cmpf one, %13, %13 : vector<2x8x256xf32>
    %cst_10 = arith.constant 0.000000e+00 : f32
    %15 = vector.broadcast %cst_10 : f32 to vector<2x8x256xf32>
    %16 = arith.select %14, %15, %13 : vector<2x8x256xi1>, vector<2x8x256xf32>
    %cst_11 = arith.constant 0x7F800000 : f32
    %17 = vector.broadcast %cst_11 : f32 to vector<2x8x256xf32>
    %18 = arith.cmpf oeq, %16, %17 : vector<2x8x256xf32>
    %cst_12 = arith.constant 1.000000e+00 : f32
    %19 = vector.broadcast %cst_12 : f32 to vector<2x8x256xf32>
    %20 = arith.select %18, %19, %16 : vector<2x8x256xi1>, vector<2x8x256xf32>
    %cst_13 = arith.constant 0xFF800000 : f32
    %21 = vector.broadcast %cst_13 : f32 to vector<2x8x256xf32>
    %22 = arith.cmpf oeq, %20, %21 : vector<2x8x256xf32>
    %cst_14 = arith.constant 0.000000e+00 : f32
    %cst_15 = arith.constant 1.000000e+00 : f32
    %23 = arith.subf %cst_14, %cst_15 : f32
    %24 = vector.broadcast %23 : f32 to vector<2x8x256xf32>
    %25 = arith.select %22, %24, %20 : vector<2x8x256xi1>, vector<2x8x256xf32>
    %26 = vector.extract_strided_slice %12 {offsets = [0, 1, 0], sizes = [2, 7, 256], strides = [1, 1, 1]} : vector<2x8x256xf32> to vector<2x7x256xf32>
    %27 = vector.extract_strided_slice %12 {offsets = [0, 0, 0], sizes = [2, 7, 256], strides = [1, 1, 1]} : vector<2x8x256xf32> to vector<2x7x256xf32>
    %28 = arith.subf %26, %27 : vector<2x7x256xf32>
    %cst_16 = arith.constant 0x7F800000 : f32
    %29 = vector.broadcast %cst_16 : f32 to vector<2x7x256xf32>
    %30 = arith.cmpf oeq, %28, %29 : vector<2x7x256xf32>
    %cst_17 = arith.constant 1.000000e+00 : f32
    %31 = vector.broadcast %cst_17 : f32 to vector<2x7x256xf32>
    %32 = arith.select %30, %31, %28 : vector<2x7x256xi1>, vector<2x7x256xf32>
    %cst_18 = arith.constant 0xFF800000 : f32
    %33 = vector.broadcast %cst_18 : f32 to vector<2x7x256xf32>
    %34 = arith.cmpf oeq, %32, %33 : vector<2x7x256xf32>
    %cst_19 = arith.constant 0.000000e+00 : f32
    %cst_20 = arith.constant 1.000000e+00 : f32
    %35 = arith.subf %cst_19, %cst_20 : f32
    %36 = vector.broadcast %35 : f32 to vector<2x7x256xf32>
    %37 = arith.select %34, %36, %32 : vector<2x7x256xi1>, vector<2x7x256xf32>
    %38 = vector.extract_strided_slice %25 {offsets = [0, 1, 0], sizes = [2, 7, 256], strides = [1, 1, 1]} : vector<2x8x256xf32> to vector<2x7x256xf32>
    %39 = vector.extract_strided_slice %25 {offsets = [0, 0, 0], sizes = [2, 7, 256], strides = [1, 1, 1]} : vector<2x8x256xf32> to vector<2x7x256xf32>
    %40 = arith.subf %38, %39 : vector<2x7x256xf32>
    %cst_21 = arith.constant 0x7F800000 : f32
    %41 = vector.broadcast %cst_21 : f32 to vector<2x7x256xf32>
    %42 = arith.cmpf oeq, %40, %41 : vector<2x7x256xf32>
    %cst_22 = arith.constant 1.000000e+00 : f32
    %43 = vector.broadcast %cst_22 : f32 to vector<2x7x256xf32>
    %44 = arith.select %42, %43, %40 : vector<2x7x256xi1>, vector<2x7x256xf32>
    %cst_23 = arith.constant 0xFF800000 : f32
    %45 = vector.broadcast %cst_23 : f32 to vector<2x7x256xf32>
    %46 = arith.cmpf oeq, %44, %45 : vector<2x7x256xf32>
    %cst_24 = arith.constant 0.000000e+00 : f32
    %cst_25 = arith.constant 1.000000e+00 : f32
    %47 = arith.subf %cst_24, %cst_25 : f32
    %48 = vector.broadcast %47 : f32 to vector<2x7x256xf32>
    %49 = arith.select %46, %48, %44 : vector<2x7x256xi1>, vector<2x7x256xf32>
    %50 = arith.subf %37, %49 : vector<2x7x256xf32>
    %51 = arith.mulf %50, %50 : vector<2x7x256xf32>
    %cst_26 = arith.constant dense<0.000000e+00> : vector<7x256xf32>
    %52 = vector.multi_reduction <add>, %51, %cst_26 [0] : vector<2x7x256xf32> to vector<7x256xf32>
    %cst_27 = arith.constant dense<0.000000e+00> : vector<256xf32>
    %53 = vector.multi_reduction <add>, %52, %cst_27 [0] : vector<7x256xf32> to vector<256xf32>
    %54 = vector.shape_cast %53 : vector<256xf32> to vector<1x256xf32>
    %55 = tpu.iota {dimensions = array<i32: 0>} : vector<8x256xi32>
    %c0_i32 = arith.constant 0 : i32
    %56 = vector.broadcast %c0_i32 : i32 to vector<8x256xi32>
    %57 = arith.cmpi eq, %55, %56 : vector<8x256xi32>
    %58 = vector.shape_cast %54 : vector<1x256xf32> to vector<1x256xf32>
    %59 = vector.broadcast %58 : vector<1x256xf32> to vector<8x256xf32>
    %cst_28 = arith.constant 0.000000e+00 : f32
    %60 = vector.broadcast %cst_28 : f32 to vector<8x256xf32>
    %61 = arith.select %57, %59, %60 : vector<8x256xi1>, vector<8x256xf32>
    %c0_29 = arith.constant 0 : index
    %c0_30 = arith.constant 0 : index
    %62 = vector.load %arg4[%c0_29, %c0_30] : memref<8x256xf32, #tpu.memory_space<vmem>>, vector<8x256xf32>
    tpu.vector_store %arg4[%c0_29, %c0_30], %61 {strides = array<i32>} : memref<8x256xf32, #tpu.memory_space<vmem>>, vector<8x256xf32>,
    return
  }
  func.func @transform_0(%arg0: i32, %arg1: i32) -> (i32, i32, i32) {
    %c0_i32 = arith.constant 0 : i32
    %c0_i32_0 = arith.constant 0 : i32
    return %arg0, %c0_i32, %arg1 : i32, i32, i32
  }
  func.func @transform_1(%arg0: i32, %arg1: i32) -> (i32, i32, i32) {
    %c0_i32 = arith.constant 0 : i32
    %c0_i32_0 = arith.constant 0 : i32
    return %arg0, %c0_i32, %arg1 : i32, i32, i32
  }
  func.func @transform_2(%arg0: i32, %arg1: i32) -> (i32, i32) {
    %c0_i32 = arith.constant 0 : i32
    return %arg0, %arg1 : i32, i32
  }
}

</mosaic_0001>

<bundles_post_ra>
// kernel: tpu_custom_call.1
= control target key start
LH: loop header
LB: loop body
LE: loop exit
PB: predicated region body
PF: predicated region fallthrough
CT: control target
= control target key end

     0   :  { %7 = vsyncpa [#allocation3], 0  ;;  %s347_s0 = inlined_call_operand.hbm [shape: f32[2,8,256], index: 0, kind: input, shape index: {}]   ;;  %s348_s1 = inlined_call_operand.hbm [shape: f32[2,8,256], index: 1, kind: input, shape index: {}]   ;;  %s349_s2 = inlined_call_operand.hbm [shape: f32[8,256], index: 2, kind: output, shape index: {}]  }
   0x1   :  { %8 = vsyncpa [#allocation6], 0 }
   0x2   :  { %9 = vsyncpa [#allocation4], 0  ;;  %s14_s11 = sshll.u32 %s347_s0, 4  ;;  %s308_s12 = smov [#allocation2]   ;;  %s15_s11 = int_to_ptr.hbm [resolvable:$true] %s14_s11 }
   0x3   :  { %s16_s13 = sshll.u32 %s308_s12, 4  ;;  %s27_s16 = sshll.u32 %s348_s1, 4  ;;  %s17_s13 = int_to_ptr.vmem [resolvable:$true] %s16_s13  ;;  %s28_s16 = int_to_ptr.hbm [resolvable:$true] %s27_s16 }
   0x4   :  { %s309_s17 = smov 256   ;;  %s310_s18 = smov 16  }
   0x5   :  { %22 = dma.hbm_to_vmem [thread:$0]  %s15_s11, 512, %s17_s13, [#allocation3], %s309_s17, %s309_s17, %s310_s18  }
   0x6   :  { %s311_s19 = smov [#allocation5]  }
   0x7   :  { %s29_s20 = sshll.u32 %s311_s19, 4  ;;  %s30_s20 = int_to_ptr.vmem [resolvable:$true] %s29_s20 }
   0x8   :  { %35 = dma.hbm_to_vmem [thread:$0]  %s28_s16, 512, %s30_s20, [#allocation6], %s309_s17, %s309_s17, %s310_s18  }
   0x9   :  { %302 = dma.done.wait [#allocation3], 512  }
   0xa   :  { %303 = vsyncadd [#allocation3], 4294966784 }
   0xb   :  { %304 = dma.done.wait [#allocation6], 512  }
   0xc   :  { %305 = vsyncadd [#allocation6], 4294966784  ;;  %v44_v0 = vld [vmem:[#allocation2] sm:$0xff]  ;;  %v46_v1 = vld [vmem:[#allocation2 + $0x10] sm:$0xff]  ;;  %vm172_vm14 = vcmask 1047553   ;;  %s312_s0 = smov [#allocation7]  }
   0xd   :  { %v72_v2 = vld [vmem:[#allocation5] sm:$0xff]  ;;  %vm48_vm0 = vcmp.ne.f32.partialorder %v44_v0, %v44_v0  ;;  %vm50_vm1 = vcmp.ne.f32.partialorder %v46_v1, %v46_v1  ;;  %v74_v3 = vld [vmem:[#allocation5 + $0x10] sm:$0xff]  ;;  %v45_v12 = vld [vmem:[#allocation2 + $0x8] sm:$0xff]  ;;  %s212_s1 = sshll.u32 %s312_s0, 4  ;;  %s214_s23 = sshll.u32 %s349_s2, 4  ;;  %s213_s1 = int_to_ptr.vmem [resolvable:$true] %s212_s1  ;;  %s215_s23 = int_to_ptr.hbm [resolvable:$true] %s214_s23 }
   0xe   :  { %vm76_vm2 = vcmp.ne.f32.partialorder %v72_v2, %v72_v2  ;;  %v52_v4 = vsel %vm48_vm0, 0.0, %v44_v0  ;;  %v54_v5 = vsel %vm50_vm1, 0.0, %v46_v1  ;;  %vm78_vm3 = vcmp.ne.f32.partialorder %v74_v3, %v74_v3  ;;  %v47_v13 = vld [vmem:[#allocation2 + $0x18] sm:$0xff]  ;;  %v73_v32 = vld [vmem:[#allocation5 + $0x8] sm:$0xff] }
   0xf   :  { %v80_v6 = vsel %vm76_vm2, 0.0, %v72_v2  ;;  %vm56_vm4 = vcmp.eq.f32.partialorder %v52_v4, inf  ;;  %vm58_vm5 = vcmp.eq.f32.partialorder %v54_v5, inf  ;;  %v82_v7 = vsel %vm78_vm3, 0.0, %v74_v3  ;;  %v75_v36 = vld [vmem:[#allocation5 + $0x18] sm:$0xff] }
  0x10   :  { %vm84_vm6 = vcmp.eq.f32.partialorder %v80_v6, inf  ;;  %v60_v8 = vsel %vm56_vm4, 1.0, %v52_v4  ;;  %v62_v9 = vsel %vm58_vm5, 1.0, %v54_v5  ;;  %vm86_vm7 = vcmp.eq.f32.partialorder %v82_v7, inf }
  0x11   :  { %v88_v10 = vsel %vm84_vm6, 1.0, %v80_v6  ;;  %vm64_vm8 = vcmp.eq.f32.partialorder %v60_v8, -inf  ;;  %vm66_vm9 = vcmp.eq.f32.partialorder %v62_v9, -inf  ;;  %v90_v11 = vsel %vm86_vm7, 1.0, %v82_v7 }
  0x12   :  { %vm92_vm10 = vcmp.eq.f32.partialorder %v88_v10, -inf  ;;  %v68_v14 = vsel %vm64_vm8, -1.0, %v60_v8  ;;  %v70_v15 = vsel %vm66_vm9, -1.0, %v62_v9  ;;  %vm94_vm11 = vcmp.eq.f32.partialorder %v90_v11, -inf }
  0x13   :  { %v96_v16 = vsel %vm92_vm10, -1.0, %v88_v10  ;;  %v98_v17 = vsel %vm94_vm11, -1.0, %v90_v11  ;;  %v104_v18 = vrot.slane %v68_v14, 7  ;;  %v106_v19 = vrot.slane %v70_v15, 7 }
  0x14   :  { %v136_v20 = vrot.slane %v96_v16, 7  ;;  %v138_v21 = vrot.slane %v98_v17, 7  ;;  %vm49_vm12 = vcmp.ne.f32.partialorder %v45_v12, %v45_v12  ;;  %vm51_vm13 = vcmp.ne.f32.partialorder %v47_v13, %v47_v13 }
  0x15   :  { %v112_v22 = vsub.f32 %v68_v14, %v104_v18  ;;  %v114_v23 = vsub.f32 %v70_v15, %v106_v19  ;;  %v53_v25 = vsel %vm49_vm12, 0.0, %v45_v12  ;;  %v55_v27 = vsel %vm51_vm13, 0.0, %v47_v13 }
  0x16   :  { %v144_v24 = vsub.f32 %v96_v16, %v136_v20  ;;  %v146_v26 = vsub.f32 %v98_v17, %v138_v21  ;;  %vm57_vm15 = vcmp.eq.f32.partialorder %v53_v25, inf  ;;  %vm59_vm3 = vcmp.eq.f32.partialorder %v55_v27, inf }
  0x17   :  { %vm116_vm0 = vcmp.eq.f32.partialorder %v112_v22, inf  ;;  %vm118_vm1 = vcmp.eq.f32.partialorder %v114_v23, inf  ;;  %v61_v39 = vsel %vm57_vm15, 1.0, %v53_v25  ;;  %v63_v40 = vsel %vm59_vm3, 1.0, %v55_v27 }
  0x18   :  { %vm148_vm2 = vcmp.eq.f32.partialorder %v144_v24, inf  ;;  %v120_v28 = vsel %vm116_vm0, 1.0, %v112_v22  ;;  %v122_v29 = vsel %vm118_vm1, 1.0, %v114_v23  ;;  %vm150_vm4 = vcmp.eq.f32.partialorder %v146_v26, inf }
  0x19   :  { %v152_v30 = vsel %vm148_vm2, 1.0, %v144_v24  ;;  %vm124_vm5 = vcmp.eq.f32.partialorder %v120_v28, -inf  ;;  %vm126_vm6 = vcmp.eq.f32.partialorder %v122_v29, -inf  ;;  %v154_v31 = vsel %vm150_vm4, 1.0, %v146_v26 }
  0x1a   :  { %vm156_vm7 = vcmp.eq.f32.partialorder %v152_v30, -inf  ;;  %v128_v33 = vsel %vm124_vm5, -1.0, %v120_v28  ;;  %v130_v34 = vsel %vm126_vm6, -1.0, %v122_v29  ;;  %vm158_vm8 = vcmp.eq.f32.partialorder %v154_v31, -inf }
  0x1b   :  { %v160_v35 = vsel %vm156_vm7, -1.0, %v152_v30  ;;  %v162_v37 = vsel %vm158_vm8, -1.0, %v154_v31  ;;  %vm65_vm9 = vcmp.eq.f32.partialorder %v61_v39, -inf  ;;  %vm67_vm10 = vcmp.eq.f32.partialorder %v63_v40, -inf }
  0x1c   :  { %v164_v38 = vsub.f32 %v128_v33, %v160_v35  ;;  %v166_v41 = vsub.f32 %v130_v34, %v162_v37  ;;  %vm77_vm11 = vcmp.ne.f32.partialorder %v73_v32, %v73_v32  ;;  %v69_v43 = vsel %vm65_vm9, -1.0, %v61_v39 }
  0x1d   :  { %v71_v44 = vsel %vm67_vm10, -1.0, %v63_v40  ;;  %vm79_vm12 = vcmp.ne.f32.partialorder %v75_v36, %v75_v36  ;;  %v81_v46 = vsel %vm77_vm11, 0.0, %v73_v32  ;;  %v105_v48 = vrot.slane %v69_v43, 7 }
  0x1e   :  { %v168_v42 = vmul.f32 %v164_v38, %v164_v38  ;;  %v170_v45 = vmul.f32 %v166_v41, %v166_v41  ;;  %v83_v47 = vsel %vm79_vm12, 0.0, %v75_v36  ;;  %vm85_vm13 = vcmp.eq.f32.partialorder %v81_v46, inf }
  0x1f   :  { %vm87_vm0 = vcmp.eq.f32.partialorder %v83_v47, inf  ;;  %v107_v50 = vrot.slane %v71_v44, 7  ;;  %v89_v52 = vsel %vm85_vm13, 1.0, %v81_v46  ;;  %v113_v54 = vsub.f32 %v69_v43, %v105_v48 }
  0x20   :  { %v173_v49 = vsel %vm172_vm14, %v168_v42, 0.0  ;;  %v174_v51 = vsel %vm172_vm14, %v170_v45, 0.0  ;;  %v91_v53 = vsel %vm87_vm0, 1.0, %v83_v47  ;;  %vm93_vm15 = vcmp.eq.f32.partialorder %v89_v52, -inf }
  0x21   :  { %v175_v55 = vadd.f32 %v174_v51, %v173_v49  ;;  %vm95_vm1 = vcmp.eq.f32.partialorder %v91_v53, -inf  ;;  %v115_v56 = vsub.f32 %v71_v44, %v107_v50  ;;  %vm185_vm2 = vcmask 1046528  }
  0x22   :  { %v97_v57 = vsel %vm93_vm15, -1.0, %v89_v52  ;;  %v99_v58 = vsel %vm95_vm1, -1.0, %v91_v53  ;;  %vm117_vm3 = vcmp.eq.f32.partialorder %v113_v54, inf  ;;  %v200_v4 = vlaneseq }
  0x23   :  { %v181_v59 = vrot.slane %v175_v55, 1  ;;  %vm119_vm4 = vcmp.eq.f32.partialorder %v115_v56, inf  ;;  %v121_v60 = vsel %vm117_vm3, 1.0, %v113_v54  ;;  %v137_v61 = vrot.slane %v97_v57, 7 }
  0x24   :  { %v123_v62 = vsel %vm119_vm4, 1.0, %v115_v56  ;;  %v139_v63 = vrot.slane %v99_v58, 7  ;;  %vm125_vm5 = vcmp.eq.f32.partialorder %v121_v60, -inf  ;;  %v201_v12 = vshrl.u32 %v200_v4, 7 }
  0x25   :  { %v186_v0 = vsel %vm185_vm2, %v181_v59, 0.0  ;;  %v145_v1 = vsub.f32 %v97_v57, %v137_v61  ;;  %vm127_vm6 = vcmp.eq.f32.partialorder %v123_v62, -inf  ;;  %v129_v6 = vsel %vm125_vm5, -1.0, %v121_v60 }
  0x26   :  { %v187_v2 = vrot.slane %v186_v0, 4  ;;  %v147_v3 = vsub.f32 %v99_v58, %v139_v63  ;;  %v131_v8 = vsel %vm127_vm6, -1.0, %v123_v62  ;;  %vm202_vm11 = vcmp.eq.s32.totalorder %v201_v12, 0 }
  0x27   :  { %vm149_vm7 = vcmp.eq.f32.partialorder %v145_v1, inf }
  0x28   :  { %v188_v5 = vadd.f32 %v187_v2, %v186_v0  ;;  %vm151_vm8 = vcmp.eq.f32.partialorder %v147_v3, inf  ;;  %v153_v7 = vsel %vm149_vm7, 1.0, %v145_v1 }
  0x29   :  { %v155_v9 = vsel %vm151_vm8, 1.0, %v147_v3  ;;  %vm157_vm9 = vcmp.eq.f32.partialorder %v153_v7, -inf }
  0x2a   :  { %v189_v10 = vrot.slane %v188_v5, 2  ;;  %vm159_vm10 = vcmp.eq.f32.partialorder %v155_v9, -inf  ;;  %v161_v11 = vsel %vm157_vm9, -1.0, %v153_v7 }
  0x2b   :  { %v163_v13 = vsel %vm159_vm10, -1.0, %v155_v9  ;;  %v165_v14 = vsub.f32 %v129_v6, %v161_v11 }
  0x2c   :  { %v190_v15 = vadd.f32 %v189_v10, %v188_v5  ;;  %v167_v16 = vsub.f32 %v131_v8, %v163_v13 }
  0x2d   :  { %v169_v17 = vmul.f32 %v165_v14, %v165_v14 }
  0x2e   :  { %v191_v18 = vrot.slane %v190_v15, 1  ;;  %v171_v19 = vmul.f32 %v167_v16, %v167_v16 }
  0x2f   :  { %v176_v20 = vsel %vm172_vm14, %v169_v17, 0.0 }
  0x30   :  { %v192_v21 = vadd.f32 %v191_v18, %v190_v15  ;;  %v177_v22 = vsel %vm172_vm14, %v171_v19, 0.0 }
  0x31   :  { %v178_v23 = vadd.f32 %v177_v22, %v176_v20 }
  0x32   :  { %v203_v24 = vsel %vm202_vm11, %v192_v21, 0.0 }
  0x33   :  { %205 = vst [vmem:[#allocation7] sm:$0xff] %v203_v24  ;;  %v182_v25 = vrot.slane %v178_v23, 1 }
  0x35   :  { %v193_v26 = vsel %vm185_vm2, %v182_v25, 0.0 }
  0x36   :  { %v194_v27 = vrot.slane %v193_v26, 4 }
  0x38   :  { %v195_v28 = vadd.f32 %v194_v27, %v193_v26 }
  0x3a   :  { %v196_v29 = vrot.slane %v195_v28, 2 }
  0x3c   :  { %v197_v30 = vadd.f32 %v196_v29, %v195_v28 }
  0x3e   :  { %v198_v31 = vrot.slane %v197_v30, 1 }
  0x40   :  { %v199_v32 = vadd.f32 %v198_v31, %v197_v30 }
  0x42   :  { %v204_v33 = vsel %vm202_vm11, %v199_v32, 0.0 }
  0x43   :  { %206 = vst [vmem:[#allocation7 + $0x8] sm:$0xff] %v204_v33 }
  0x44   :  { %217 = dma.vmem_to_hbm [thread:$0]  %s213_s1, 256, %s215_s23, [#allocation4]  }
  0x45   :  { %306 = dma.done.wait [#allocation4], 256  }
  0x46   :  { %307 = vsyncadd [#allocation4], 4294967040 }
  0x47   :  { %222 = vsyncpa [#allocation3], 1 }
  0x48   :  { %223 = vsyncpa [#allocation6], 1 }
  0x49   :  { %224 = vsyncpa [#allocation4], 1 }

</bundles_post_ra>
